<compile_context>
chip_gen: v7x
topology: tpu7x:2x2x1
jax: 0.10.0
libtpu: 0.0.40
codegen_flags: <defaults>
</compile_context>

<pallas_src>
import jax
import jax.numpy as jnp
from jax.experimental import pallas as pl
from jax.experimental.pallas import tpu as pltpu


def _lm_kernel(x_ref, wih_ref, whh_ref, wout_ref, bout_ref, o_ref):
    """x_ref: (B, T) int32 tokens in SMEM.
    wih_ref: (V, 1, H) bias-folded W_ih^T gather table (VMEM).
    whh_ref: (H, H) W_hh^T, wout_ref: (H, V) W_out^T, bout_ref: (1, V).
    o_ref:   (B, T*V) batch-major logits slab."""
    B, T = x_ref.shape
    H = whh_ref.shape[0]
    V = wout_ref.shape[1]

    # Hoisted loads — done once, outside the time loop.
    w_hh = whh_ref[...]      # (H, H)
    w_out = wout_ref[...]    # (H, V)
    b_out = bout_ref[...]    # (1, V), broadcasts over batch rows

    h = jnp.zeros((B, H), jnp.float32)   # nn.RNN default initial hidden state

    # Only the W_hh recurrence is inherently sequential; T is small & static so
    # the time loop is fully unrolled.  All Ref indexing below is static except
    # the data-dependent token row gather (dynamic leading-axis index).
    for t in range(T):
        # x_t @ W_ih^T + (b_ih + b_hh)  ==  row gather from the bias-folded table.
        rows = [wih_ref[x_ref[b, t]].reshape(1, H) for b in range(B)]  # B x (1, H)
        x_c = jnp.concatenate(rows, axis=0)                            # (B, H)

        # RNN recurrence (tanh); matmul on the MXU with f32 accumulation.
        h = jnp.tanh(x_c + jnp.dot(h, w_hh, preferred_element_type=jnp.float32))

        # Final linear projection to vocabulary logits for this step.
        logits_t = jnp.dot(h, w_out, preferred_element_type=jnp.float32) + b_out

        # Batch-major, lane-contiguous write: columns [t*V, (t+1)*V) of (B, T*V).
        o_ref[:, t * V:(t + 1) * V] = logits_t


def language_model_forward(X, w_ih_rows, w_hh_t, w_out_t, b_out):
    """X: (B, T) int32 tokens.
    w_ih_rows: (V, 1, H) = W_ih^T with (b_ih + b_hh) folded into every row.
    Returns (B, T, V) float32 logits (matches PyTorch forward output)."""
    B, T = X.shape
    V, _, H = w_ih_rows.shape

    out_flat = pl.pallas_call(
        _lm_kernel,
        out_shape=jax.ShapeDtypeStruct((B, T * V), jnp.float32),
        in_specs=[
            pl.BlockSpec(memory_space=pltpu.MemorySpace.SMEM),  # tokens (B, T)
            pl.BlockSpec(memory_space=pltpu.MemorySpace.VMEM),  # W_ih^T(+bias) rows
            pl.BlockSpec(memory_space=pltpu.MemorySpace.VMEM),  # W_hh^T (H, H)
            pl.BlockSpec(memory_space=pltpu.MemorySpace.VMEM),  # W_out^T (H, V)
            pl.BlockSpec(memory_space=pltpu.MemorySpace.VMEM),  # b_out (1, V)
        ],
        out_specs=pl.BlockSpec(memory_space=pltpu.MemorySpace.VMEM),
    )(X, w_ih_rows, w_hh_t, w_out_t, b_out)

    # (B, T*V) -> (B, T, V): contiguous, metadata-only reshape (no HBM transpose).
    return out_flat.reshape(B, T, V)


def _reference_forward(X, w_ih, w_hh, b_ih, b_hh, w_out, b_out):
    """Pure-JAX reference mirroring the PyTorch module semantics exactly."""
    B, T = X.shape
    H, V = w_ih.shape
    onehot = jax.nn.one_hot(X.T, V, dtype=jnp.float32)          # (T, B, V)
    h = jnp.zeros((B, H), jnp.float32)
    outs = []
    for t in range(T):
        h = jnp.tanh(onehot[t] @ w_ih.T + h @ w_hh.T + b_ih + b_hh)
        outs.append(h @ w_out.T + b_out)
    y = jnp.stack(outs, axis=0)                                 # (T, B, V)
    return jnp.transpose(y, (1, 0, 2))                          # (B, T, V)


if __name__ == "__main__":
    # Small shapes: batch=2, seq=8, vocab=16, hidden=32
    B, T, V, H = 2, 8, 16, 32

    key = jax.random.PRNGKey(0)
    k_tok, k_wih, k_whh, k_bih, k_bhh, k_wo, k_bo = jax.random.split(key, 7)

    # Deterministic synthetic parameters (shapes follow nn.RNN / nn.Linear):
    # nn.RNN: weight_ih (H, V), weight_hh (H, H), bias_ih (H,), bias_hh (H,)
    # nn.LazyLinear(num_vocab): weight (V, H), bias (V,)
    scale = 0.1
    w_ih = scale * jax.random.normal(k_wih, (H, V), jnp.float32)
    w_hh = scale * jax.random.normal(k_whh, (H, H), jnp.float32)
    b_ih = scale * jax.random.normal(k_bih, (H,), jnp.float32)
    b_hh = scale * jax.random.normal(k_bhh, (H,), jnp.float32)
    w_out = scale * jax.random.normal(k_wo, (V, H), jnp.float32)
    b_out = scale * jax.random.normal(k_bo, (V,), jnp.float32)

    # Parameter glue for the kernel (plain JAX, done once):
    #  * gather table = W_ih^T with the combined RNN bias folded into every row,
    #    reshaped to (V, 1, H) so token rows are fetched via leading-axis index.
    w_ih_rows = (w_ih.T + (b_ih + b_hh)[None, :]).reshape(V, 1, H)
    w_hh_t = w_hh.T                           # (H, H)
    w_out_t = w_out.T                         # (H, V)
    b_out_r = b_out.reshape(1, V)             # (1, V)

    X = jax.random.randint(k_tok, (B, T), 0, V, dtype=jnp.int32)

    out = language_model_forward(X, w_ih_rows, w_hh_t, w_out_t, b_out_r)
    out = jax.block_until_ready(out)

    ref = _reference_forward(X, w_ih, w_hh, b_ih, b_hh, w_out, b_out)
    assert out.shape == (B, T, V)
    assert jnp.allclose(out, ref, rtol=1e-3, atol=1e-3), "mismatch vs reference"

    print("KERNEL_OK")
</pallas_src>

<mosaic_0001>
module attributes {stable_mosaic.version = 11 : i64} {
  func.func @_lm_kernel(%arg0: memref<2x8xi32, #tpu.memory_space<smem>>, %arg1: memref<16x1x32xf32, #tpu.memory_space<vmem>>, %arg2: memref<32x32xf32, #tpu.memory_space<vmem>>, %arg3: memref<32x16xf32, #tpu.memory_space<vmem>>, %arg4: memref<1x16xf32, #tpu.memory_space<vmem>>, %arg5: memref<2x128xf32, #tpu.memory_space<vmem>>) attributes {dimension_semantics = [], scalar_prefetch = 0 : i64, scratch_operands = 0 : i64, tpu.core_type = #tpu.core_type<tc>} {
    %c0 = arith.constant 0 : index
    %c0_0 = arith.constant 0 : index
    %0 = vector.load %arg2[%c0, %c0_0] : memref<32x32xf32, #tpu.memory_space<vmem>>, vector<32x32xf32>
    %c0_1 = arith.constant 0 : index
    %c0_2 = arith.constant 0 : index
    %1 = vector.load %arg3[%c0_1, %c0_2] : memref<32x16xf32, #tpu.memory_space<vmem>>, vector<32x16xf32>
    %c0_3 = arith.constant 0 : index
    %c0_4 = arith.constant 0 : index
    %2 = vector.load %arg4[%c0_3, %c0_4] : memref<1x16xf32, #tpu.memory_space<vmem>>, vector<1x16xf32>
    %cst = arith.constant 0.000000e+00 : f32
    %3 = vector.broadcast %cst : f32 to vector<2x32xf32>
    %c0_5 = arith.constant 0 : index
    %c0_6 = arith.constant 0 : index
    %4 = memref.load %arg0[%c0_5, %c0_6] : memref<2x8xi32, #tpu.memory_space<smem>>
    %5 = arith.index_cast %4 : i32 to index
    %c0_7 = arith.constant 0 : index
    %c0_8 = arith.constant 0 : index
    %6 = vector.load %arg1[%5, %c0_7, %c0_8] : memref<16x1x32xf32, #tpu.memory_space<vmem>>, vector<1x1x32xf32>
    %7 = vector.shape_cast %6 : vector<1x1x32xf32> to vector<1x32xf32>
    %c1 = arith.constant 1 : index
    %c0_9 = arith.constant 0 : index
    %8 = memref.load %arg0[%c1, %c0_9] : memref<2x8xi32, #tpu.memory_space<smem>>
    %9 = arith.index_cast %8 : i32 to index
    %c0_10 = arith.constant 0 : index
    %c0_11 = arith.constant 0 : index
    %10 = vector.load %arg1[%9, %c0_10, %c0_11] : memref<16x1x32xf32, #tpu.memory_space<vmem>>, vector<1x1x32xf32>
    %11 = vector.shape_cast %10 : vector<1x1x32xf32> to vector<1x32xf32>
    %12 = tpu.concatenate %7, %11 in 0 : vector<1x32xf32>, vector<1x32xf32> -> vector<2x32xf32>
    %cst_12 = arith.constant dense<0.000000e+00> : vector<2x32xf32>
    %13 = tpu.matmul %3, %0, %cst_12 {dimension_numbers = #tpu.dot_dimension_numbers<[1], [0], [0], [1], [0, 0, 1, 1], [], []>} : vector<2x32xf32>, vector<32x32xf32>, vector<2x32xf32> -> vector<2x32xf32>
    %14 = arith.addf %12, %13 : vector<2x32xf32>
    %15 = math.tanh %14 : vector<2x32xf32>
    %cst_13 = arith.constant dense<0.000000e+00> : vector<2x16xf32>
    %16 = tpu.matmul %15, %1, %cst_13 {dimension_numbers = #tpu.dot_dimension_numbers<[1], [0], [0], [1], [0, 0, 1, 1], [], []>} : vector<2x32xf32>, vector<32x16xf32>, vector<2x16xf32> -> vector<2x16xf32>
    %17 = vector.broadcast %2 : vector<1x16xf32> to vector<2x16xf32>
    %18 = arith.addf %16, %17 : vector<2x16xf32>
    %c0_14 = arith.constant 0 : index
    %c0_15 = arith.constant 0 : index
    %19 = vector.load %arg5[%c0_14, %c0_15] : memref<2x128xf32, #tpu.memory_space<vmem>>, vector<2x16xf32>
    tpu.vector_store %arg5[%c0_14, %c0_15], %18 {strides = array<i32>} : memref<2x128xf32, #tpu.memory_space<vmem>>, vector<2x16xf32>,
    %c0_16 = arith.constant 0 : index
    %c1_17 = arith.constant 1 : index
    %20 = memref.load %arg0[%c0_16, %c1_17] : memref<2x8xi32, #tpu.memory_space<smem>>
    %21 = arith.index_cast %20 : i32 to index
    %c0_18 = arith.constant 0 : index
    %c0_19 = arith.constant 0 : index
    %22 = vector.load %arg1[%21, %c0_18, %c0_19] : memref<16x1x32xf32, #tpu.memory_space<vmem>>, vector<1x1x32xf32>
    %23 = vector.shape_cast %22 : vector<1x1x32xf32> to vector<1x32xf32>
    %c1_20 = arith.constant 1 : index
    %c1_21 = arith.constant 1 : index
    %24 = memref.load %arg0[%c1_20, %c1_21] : memref<2x8xi32, #tpu.memory_space<smem>>
    %25 = arith.index_cast %24 : i32 to index
    %c0_22 = arith.constant 0 : index
    %c0_23 = arith.constant 0 : index
    %26 = vector.load %arg1[%25, %c0_22, %c0_23] : memref<16x1x32xf32, #tpu.memory_space<vmem>>, vector<1x1x32xf32>
    %27 = vector.shape_cast %26 : vector<1x1x32xf32> to vector<1x32xf32>
    %28 = tpu.concatenate %23, %27 in 0 : vector<1x32xf32>, vector<1x32xf32> -> vector<2x32xf32>
    %cst_24 = arith.constant dense<0.000000e+00> : vector<2x32xf32>
    %29 = tpu.matmul %15, %0, %cst_24 {dimension_numbers = #tpu.dot_dimension_numbers<[1], [0], [0], [1], [0, 0, 1, 1], [], []>} : vector<2x32xf32>, vector<32x32xf32>, vector<2x32xf32> -> vector<2x32xf32>
    %30 = arith.addf %28, %29 : vector<2x32xf32>
    %31 = math.tanh %30 : vector<2x32xf32>
    %cst_25 = arith.constant dense<0.000000e+00> : vector<2x16xf32>
    %32 = tpu.matmul %31, %1, %cst_25 {dimension_numbers = #tpu.dot_dimension_numbers<[1], [0], [0], [1], [0, 0, 1, 1], [], []>} : vector<2x32xf32>, vector<32x16xf32>, vector<2x16xf32> -> vector<2x16xf32>
    %33 = vector.broadcast %2 : vector<1x16xf32> to vector<2x16xf32>
    %34 = arith.addf %32, %33 : vector<2x16xf32>
    %c0_26 = arith.constant 0 : index
    %c16 = arith.constant 16 : index
    %35 = vector.load %arg5[%c0_26, %c16] : memref<2x128xf32, #tpu.memory_space<vmem>>, vector<2x16xf32>
    tpu.vector_store %arg5[%c0_26, %c16], %34 {strides = array<i32>} : memref<2x128xf32, #tpu.memory_space<vmem>>, vector<2x16xf32>,
    %c0_27 = arith.constant 0 : index
    %c2 = arith.constant 2 : index
    %36 = memref.load %arg0[%c0_27, %c2] : memref<2x8xi32, #tpu.memory_space<smem>>
    %37 = arith.index_cast %36 : i32 to index
    %c0_28 = arith.constant 0 : index
    %c0_29 = arith.constant 0 : index
    %38 = vector.load %arg1[%37, %c0_28, %c0_29] : memref<16x1x32xf32, #tpu.memory_space<vmem>>, vector<1x1x32xf32>
    %39 = vector.shape_cast %38 : vector<1x1x32xf32> to vector<1x32xf32>
    %c1_30 = arith.constant 1 : index
    %c2_31 = arith.constant 2 : index
    %40 = memref.load %arg0[%c1_30, %c2_31] : memref<2x8xi32, #tpu.memory_space<smem>>
    %41 = arith.index_cast %40 : i32 to index
    %c0_32 = arith.constant 0 : index
    %c0_33 = arith.constant 0 : index
    %42 = vector.load %arg1[%41, %c0_32, %c0_33] : memref<16x1x32xf32, #tpu.memory_space<vmem>>, vector<1x1x32xf32>
    %43 = vector.shape_cast %42 : vector<1x1x32xf32> to vector<1x32xf32>
    %44 = tpu.concatenate %39, %43 in 0 : vector<1x32xf32>, vector<1x32xf32> -> vector<2x32xf32>
    %cst_34 = arith.constant dense<0.000000e+00> : vector<2x32xf32>
    %45 = tpu.matmul %31, %0, %cst_34 {dimension_numbers = #tpu.dot_dimension_numbers<[1], [0], [0], [1], [0, 0, 1, 1], [], []>} : vector<2x32xf32>, vector<32x32xf32>, vector<2x32xf32> -> vector<2x32xf32>
    %46 = arith.addf %44, %45 : vector<2x32xf32>
    %47 = math.tanh %46 : vector<2x32xf32>
    %cst_35 = arith.constant dense<0.000000e+00> : vector<2x16xf32>
    %48 = tpu.matmul %47, %1, %cst_35 {dimension_numbers = #tpu.dot_dimension_numbers<[1], [0], [0], [1], [0, 0, 1, 1], [], []>} : vector<2x32xf32>, vector<32x16xf32>, vector<2x16xf32> -> vector<2x16xf32>
    %49 = vector.broadcast %2 : vector<1x16xf32> to vector<2x16xf32>
    %50 = arith.addf %48, %49 : vector<2x16xf32>
    %c0_36 = arith.constant 0 : index
    %c32 = arith.constant 32 : index
    %51 = vector.load %arg5[%c0_36, %c32] : memref<2x128xf32, #tpu.memory_space<vmem>>, vector<2x16xf32>
    tpu.vector_store %arg5[%c0_36, %c32], %50 {strides = array<i32>} : memref<2x128xf32, #tpu.memory_space<vmem>>, vector<2x16xf32>,
    %c0_37 = arith.constant 0 : index
    %c3 = arith.constant 3 : index
    %52 = memref.load %arg0[%c0_37, %c3] : memref<2x8xi32, #tpu.memory_space<smem>>
    %53 = arith.index_cast %52 : i32 to index
    %c0_38 = arith.constant 0 : index
    %c0_39 = arith.constant 0 : index
    %54 = vector.load %arg1[%53, %c0_38, %c0_39] : memref<16x1x32xf32, #tpu.memory_space<vmem>>, vector<1x1x32xf32>
    %55 = vector.shape_cast %54 : vector<1x1x32xf32> to vector<1x32xf32>
    %c1_40 = arith.constant 1 : index
    %c3_41 = arith.constant 3 : index
    %56 = memref.load %arg0[%c1_40, %c3_41] : memref<2x8xi32, #tpu.memory_space<smem>>
    %57 = arith.index_cast %56 : i32 to index
    %c0_42 = arith.constant 0 : index
    %c0_43 = arith.constant 0 : index
    %58 = vector.load %arg1[%57, %c0_42, %c0_43] : memref<16x1x32xf32, #tpu.memory_space<vmem>>, vector<1x1x32xf32>
    %59 = vector.shape_cast %58 : vector<1x1x32xf32> to vector<1x32xf32>
    %60 = tpu.concatenate %55, %59 in 0 : vector<1x32xf32>, vector<1x32xf32> -> vector<2x32xf32>
    %cst_44 = arith.constant dense<0.000000e+00> : vector<2x32xf32>
    %61 = tpu.matmul %47, %0, %cst_44 {dimension_numbers = #tpu.dot_dimension_numbers<[1], [0], [0], [1], [0, 0, 1, 1], [], []>} : vector<2x32xf32>, vector<32x32xf32>, vector<2x32xf32> -> vector<2x32xf32>
    %62 = arith.addf %60, %61 : vector<2x32xf32>
    %63 = math.tanh %62 : vector<2x32xf32>
    %cst_45 = arith.constant dense<0.000000e+00> : vector<2x16xf32>
    %64 = tpu.matmul %63, %1, %cst_45 {dimension_numbers = #tpu.dot_dimension_numbers<[1], [0], [0], [1], [0, 0, 1, 1], [], []>} : vector<2x32xf32>, vector<32x16xf32>, vector<2x16xf32> -> vector<2x16xf32>
    %65 = vector.broadcast %2 : vector<1x16xf32> to vector<2x16xf32>
    %66 = arith.addf %64, %65 : vector<2x16xf32>
    %c0_46 = arith.constant 0 : index
    %c48 = arith.constant 48 : index
    %67 = vector.load %arg5[%c0_46, %c48] : memref<2x128xf32, #tpu.memory_space<vmem>>, vector<2x16xf32>
    tpu.vector_store %arg5[%c0_46, %c48], %66 {strides = array<i32>} : memref<2x128xf32, #tpu.memory_space<vmem>>, vector<2x16xf32>,
    %c0_47 = arith.constant 0 : index
    %c4 = arith.constant 4 : index
    %68 = memref.load %arg0[%c0_47, %c4] : memref<2x8xi32, #tpu.memory_space<smem>>
    %69 = arith.index_cast %68 : i32 to index
    %c0_48 = arith.constant 0 : index
    %c0_49 = arith.constant 0 : index
    %70 = vector.load %arg1[%69, %c0_48, %c0_49] : memref<16x1x32xf32, #tpu.memory_space<vmem>>, vector<1x1x32xf32>
    %71 = vector.shape_cast %70 : vector<1x1x32xf32> to vector<1x32xf32>
    %c1_50 = arith.constant 1 : index
    %c4_51 = arith.constant 4 : index
    %72 = memref.load %arg0[%c1_50, %c4_51] : memref<2x8xi32, #tpu.memory_space<smem>>
    %73 = arith.index_cast %72 : i32 to index
    %c0_52 = arith.constant 0 : index
    %c0_53 = arith.constant 0 : index
    %74 = vector.load %arg1[%73, %c0_52, %c0_53] : memref<16x1x32xf32, #tpu.memory_space<vmem>>, vector<1x1x32xf32>
    %75 = vector.shape_cast %74 : vector<1x1x32xf32> to vector<1x32xf32>
    %76 = tpu.concatenate %71, %75 in 0 : vector<1x32xf32>, vector<1x32xf32> -> vector<2x32xf32>
    %cst_54 = arith.constant dense<0.000000e+00> : vector<2x32xf32>
    %77 = tpu.matmul %63, %0, %cst_54 {dimension_numbers = #tpu.dot_dimension_numbers<[1], [0], [0], [1], [0, 0, 1, 1], [], []>} : vector<2x32xf32>, vector<32x32xf32>, vector<2x32xf32> -> vector<2x32xf32>
    %78 = arith.addf %76, %77 : vector<2x32xf32>
    %79 = math.tanh %78 : vector<2x32xf32>
    %cst_55 = arith.constant dense<0.000000e+00> : vector<2x16xf32>
    %80 = tpu.matmul %79, %1, %cst_55 {dimension_numbers = #tpu.dot_dimension_numbers<[1], [0], [0], [1], [0, 0, 1, 1], [], []>} : vector<2x32xf32>, vector<32x16xf32>, vector<2x16xf32> -> vector<2x16xf32>
    %81 = vector.broadcast %2 : vector<1x16xf32> to vector<2x16xf32>
    %82 = arith.addf %80, %81 : vector<2x16xf32>
    %c0_56 = arith.constant 0 : index
    %c64 = arith.constant 64 : index
    %83 = vector.load %arg5[%c0_56, %c64] : memref<2x128xf32, #tpu.memory_space<vmem>>, vector<2x16xf32>
    tpu.vector_store %arg5[%c0_56, %c64], %82 {strides = array<i32>} : memref<2x128xf32, #tpu.memory_space<vmem>>, vector<2x16xf32>,
    %c0_57 = arith.constant 0 : index
    %c5 = arith.constant 5 : index
    %84 = memref.load %arg0[%c0_57, %c5] : memref<2x8xi32, #tpu.memory_space<smem>>
    %85 = arith.index_cast %84 : i32 to index
    %c0_58 = arith.constant 0 : index
    %c0_59 = arith.constant 0 : index
    %86 = vector.load %arg1[%85, %c0_58, %c0_59] : memref<16x1x32xf32, #tpu.memory_space<vmem>>, vector<1x1x32xf32>
    %87 = vector.shape_cast %86 : vector<1x1x32xf32> to vector<1x32xf32>
    %c1_60 = arith.constant 1 : index
    %c5_61 = arith.constant 5 : index
    %88 = memref.load %arg0[%c1_60, %c5_61] : memref<2x8xi32, #tpu.memory_space<smem>>
    %89 = arith.index_cast %88 : i32 to index
    %c0_62 = arith.constant 0 : index
    %c0_63 = arith.constant 0 : index
    %90 = vector.load %arg1[%89, %c0_62, %c0_63] : memref<16x1x32xf32, #tpu.memory_space<vmem>>, vector<1x1x32xf32>
    %91 = vector.shape_cast %90 : vector<1x1x32xf32> to vector<1x32xf32>
    %92 = tpu.concatenate %87, %91 in 0 : vector<1x32xf32>, vector<1x32xf32> -> vector<2x32xf32>
    %cst_64 = arith.constant dense<0.000000e+00> : vector<2x32xf32>
    %93 = tpu.matmul %79, %0, %cst_64 {dimension_numbers = #tpu.dot_dimension_numbers<[1], [0], [0], [1], [0, 0, 1, 1], [], []>} : vector<2x32xf32>, vector<32x32xf32>, vector<2x32xf32> -> vector<2x32xf32>
    %94 = arith.addf %92, %93 : vector<2x32xf32>
    %95 = math.tanh %94 : vector<2x32xf32>
    %cst_65 = arith.constant dense<0.000000e+00> : vector<2x16xf32>
    %96 = tpu.matmul %95, %1, %cst_65 {dimension_numbers = #tpu.dot_dimension_numbers<[1], [0], [0], [1], [0, 0, 1, 1], [], []>} : vector<2x32xf32>, vector<32x16xf32>, vector<2x16xf32> -> vector<2x16xf32>
    %97 = vector.broadcast %2 : vector<1x16xf32> to vector<2x16xf32>
    %98 = arith.addf %96, %97 : vector<2x16xf32>
    %c0_66 = arith.constant 0 : index
    %c80 = arith.constant 80 : index
    %99 = vector.load %arg5[%c0_66, %c80] : memref<2x128xf32, #tpu.memory_space<vmem>>, vector<2x16xf32>
    tpu.vector_store %arg5[%c0_66, %c80], %98 {strides = array<i32>} : memref<2x128xf32, #tpu.memory_space<vmem>>, vector<2x16xf32>,
    %c0_67 = arith.constant 0 : index
    %c6 = arith.constant 6 : index
    %100 = memref.load %arg0[%c0_67, %c6] : memref<2x8xi32, #tpu.memory_space<smem>>
    %101 = arith.index_cast %100 : i32 to index
    %c0_68 = arith.constant 0 : index
    %c0_69 = arith.constant 0 : index
    %102 = vector.load %arg1[%101, %c0_68, %c0_69] : memref<16x1x32xf32, #tpu.memory_space<vmem>>, vector<1x1x32xf32>
    %103 = vector.shape_cast %102 : vector<1x1x32xf32> to vector<1x32xf32>
    %c1_70 = arith.constant 1 : index
    %c6_71 = arith.constant 6 : index
    %104 = memref.load %arg0[%c1_70, %c6_71] : memref<2x8xi32, #tpu.memory_space<smem>>
    %105 = arith.index_cast %104 : i32 to index
    %c0_72 = arith.constant 0 : index
    %c0_73 = arith.constant 0 : index
    %106 = vector.load %arg1[%105, %c0_72, %c0_73] : memref<16x1x32xf32, #tpu.memory_space<vmem>>, vector<1x1x32xf32>
    %107 = vector.shape_cast %106 : vector<1x1x32xf32> to vector<1x32xf32>
    %108 = tpu.concatenate %103, %107 in 0 : vector<1x32xf32>, vector<1x32xf32> -> vector<2x32xf32>
    %cst_74 = arith.constant dense<0.000000e+00> : vector<2x32xf32>
    %109 = tpu.matmul %95, %0, %cst_74 {dimension_numbers = #tpu.dot_dimension_numbers<[1], [0], [0], [1], [0, 0, 1, 1], [], []>} : vector<2x32xf32>, vector<32x32xf32>, vector<2x32xf32> -> vector<2x32xf32>
    %110 = arith.addf %108, %109 : vector<2x32xf32>
    %111 = math.tanh %110 : vector<2x32xf32>
    %cst_75 = arith.constant dense<0.000000e+00> : vector<2x16xf32>
    %112 = tpu.matmul %111, %1, %cst_75 {dimension_numbers = #tpu.dot_dimension_numbers<[1], [0], [0], [1], [0, 0, 1, 1], [], []>} : vector<2x32xf32>, vector<32x16xf32>, vector<2x16xf32> -> vector<2x16xf32>
    %113 = vector.broadcast %2 : vector<1x16xf32> to vector<2x16xf32>
    %114 = arith.addf %112, %113 : vector<2x16xf32>
    %c0_76 = arith.constant 0 : index
    %c96 = arith.constant 96 : index
    %115 = vector.load %arg5[%c0_76, %c96] : memref<2x128xf32, #tpu.memory_space<vmem>>, vector<2x16xf32>
    tpu.vector_store %arg5[%c0_76, %c96], %114 {strides = array<i32>} : memref<2x128xf32, #tpu.memory_space<vmem>>, vector<2x16xf32>,
    %c0_77 = arith.constant 0 : index
    %c7 = arith.constant 7 : index
    %116 = memref.load %arg0[%c0_77, %c7] : memref<2x8xi32, #tpu.memory_space<smem>>
    %117 = arith.index_cast %116 : i32 to index
    %c0_78 = arith.constant 0 : index
    %c0_79 = arith.constant 0 : index
    %118 = vector.load %arg1[%117, %c0_78, %c0_79] : memref<16x1x32xf32, #tpu.memory_space<vmem>>, vector<1x1x32xf32>
    %119 = vector.shape_cast %118 : vector<1x1x32xf32> to vector<1x32xf32>
    %c1_80 = arith.constant 1 : index
    %c7_81 = arith.constant 7 : index
    %120 = memref.load %arg0[%c1_80, %c7_81] : memref<2x8xi32, #tpu.memory_space<smem>>
    %121 = arith.index_cast %120 : i32 to index
    %c0_82 = arith.constant 0 : index
    %c0_83 = arith.constant 0 : index
    %122 = vector.load %arg1[%121, %c0_82, %c0_83] : memref<16x1x32xf32, #tpu.memory_space<vmem>>, vector<1x1x32xf32>
    %123 = vector.shape_cast %122 : vector<1x1x32xf32> to vector<1x32xf32>
    %124 = tpu.concatenate %119, %123 in 0 : vector<1x32xf32>, vector<1x32xf32> -> vector<2x32xf32>
    %cst_84 = arith.constant dense<0.000000e+00> : vector<2x32xf32>
    %125 = tpu.matmul %111, %0, %cst_84 {dimension_numbers = #tpu.dot_dimension_numbers<[1], [0], [0], [1], [0, 0, 1, 1], [], []>} : vector<2x32xf32>, vector<32x32xf32>, vector<2x32xf32> -> vector<2x32xf32>
    %126 = arith.addf %124, %125 : vector<2x32xf32>
    %127 = math.tanh %126 : vector<2x32xf32>
    %cst_85 = arith.constant dense<0.000000e+00> : vector<2x16xf32>
    %128 = tpu.matmul %127, %1, %cst_85 {dimension_numbers = #tpu.dot_dimension_numbers<[1], [0], [0], [1], [0, 0, 1, 1], [], []>} : vector<2x32xf32>, vector<32x16xf32>, vector<2x16xf32> -> vector<2x16xf32>
    %129 = vector.broadcast %2 : vector<1x16xf32> to vector<2x16xf32>
    %130 = arith.addf %128, %129 : vector<2x16xf32>
    %c0_86 = arith.constant 0 : index
    %c112 = arith.constant 112 : index
    %131 = vector.load %arg5[%c0_86, %c112] : memref<2x128xf32, #tpu.memory_space<vmem>>, vector<2x16xf32>
    tpu.vector_store %arg5[%c0_86, %c112], %130 {strides = array<i32>} : memref<2x128xf32, #tpu.memory_space<vmem>>, vector<2x16xf32>,
    return
  }
}

</mosaic_0001>

<bundles_post_ra>
// kernel: tpu_custom_call.1
= control target key start
LH: loop header
LB: loop body
LE: loop exit
PB: predicated region body
PF: predicated region fallthrough
CT: control target
= control target key end

     0   :  { %10 = vsyncpa [#allocation4], 0  ;;  %s2120_s0 = inlined_call_operand.vmem [shape: s32[2,8], index: 0, kind: input, shape index: {}]   ;;  %s2121_s1 = inlined_call_operand.vmem [shape: f32[16,1,32], index: 1, kind: input, shape index: {}]   ;;  %s2122_s2 = inlined_call_operand.vmem [shape: f32[32,32], index: 2, kind: input, shape index: {}]   ;;  %s2123_s3 = inlined_call_operand.vmem [shape: f32[32,16], index: 3, kind: input, shape index: {}]   ;;  %s2124_s4 = inlined_call_operand.vmem [shape: f32[1,16], index: 4, kind: input, shape index: {}]   ;;  %s2125_s5 = inlined_call_operand.hbm [shape: f32[2,128], index: 5, kind: output, shape index: {}]  }
   0x1   :  { %11 = vsyncpa [#allocation3], 0  ;;  %s18_s20 = sshll.u32 %s2120_s0, 4  ;;  %s19_s20 = int_to_ptr.vmem [resolvable:$true] %s18_s20 }
   0x2   :  { %s1812_s21 = scalar_lea.vmem %s19_s20, 32  ;;  %p1817_p1 = scmp.lt.s32.totalorder %s19_s20, %s19_s20 }
   0x3   :  { %p1813_p0 = scmp.ne.s32.totalorder %s19_s20, %s1812_s21  ;;  %p1818_p2 = scmp.lt.s32.totalorder %s1812_s21, %s1812_s21 }
   0x5   :  { %p1819_p3 = por %p1818_p2, %p1817_p1 }
   0x7   :  { %p1820_p4 = pnand %p1819_p3, %p1813_p0 }
   0x9   :  { %1823 = shalt.err (!%p1820_p4)
}
   0xa   :  { %s1850_s22 = smov [#allocation2]  }
   0xb   :  { %21 = dma.vmem_to_smem %s19_s20, 32, %s1850_s22, [#allocation4]  }
   0xc   :  { %1846 = dma.done.wait [#allocation4], 32  }
   0xd   :  { %1847 = vsyncadd [#allocation4], 4294967264 }
   0xe   :  { %33 = sfence }
   0xf   :  { %v34_v0 = vld [vmem:[%s2122_s2] sm:$0xff]  ;;  %v35_v1 = vld [vmem:[%s2122_s2 + $0x8] sm:$0xff]  ;;  %v36_v2 = vld [vmem:[%s2122_s2 + $0x10] sm:$0xff]  ;;  %v1851_v3 = vmov 0.0|0.0   ;;  %vm1852_vm0 = vmmov 0   ;;  %v1853_v6 = vmov 0.0  }
  0x10   :  { %1688 = vmatprep.subr.bf16.mxu0 %v1851_v3  ;;  %v1905_v4 = vpack.c.bf16 %v35_v1, %v34_v0  ;;  %v37_v5 = vld [vmem:[%s2122_s2 + $0x18] sm:$0xff]  ;;  %1520 = vmatprep.mubr.msk.f32.mxu0 %vm1852_vm0, %v1853_v6  ;;  %v38_v8 = vld [vmem:[%s2123_s3] sm:$0xff]  ;;  %v39_v9 = vld [vmem:[%s2123_s3 + $0x8] sm:$0xff]  ;;  %s43_s12 = sld [smem:[#allocation2]]  ;;  %vm55_vm1 = vcmask 1040384   ;;  %vm57_vm2 = vcmask 261120  }
  0x11   :  { %1694 = vmatprep.subr.bf16.mxu1 %v1851_v3  ;;  %1531 = vmatprep.mubr.msk.f32.mxu1 %vm1852_vm0, %v1853_v6  ;;  %v1916_v7 = vpack.c.bf16 %v37_v5, %v36_v2  ;;  %v40_v10 = vld [vmem:[%s2123_s3 + $0x10] sm:$0xff]  ;;  %v1937_v11 = vpack.c.bf16 %v39_v9, %v38_v8  ;;  %v41_v12 = vld [vmem:[%s2123_s3 + $0x18] sm:$0xff]  ;;  %s1393_s13 = sld [smem:[#allocation2 + $0x80]]  ;;  %s1397_s19 = sld [smem:[#allocation2 + $0x1]]  ;;  %v1978_v23 = vld [vmem:[%s2124_s4] ss:$0 sm:$0xff] }
  0x12   :  { %1690 = vmatpush3.bf16.msra.mxu0 %v1905_v4  ;;  %v1943_v13 = vpack.c.bf16 %v41_v12, %v40_v10  ;;  %s1398_s20 = sld [smem:[#allocation2 + $0x81]]  ;;  %vm212_vm3 = vcmask 123904   ;;  %s1402_s4 = sld [smem:[#allocation2 + $0x2]]  ;;  %vm376_vm4 = vcmask 255104   ;;  %vm540_vm5 = vcmask 386304  }
  0x13   :  { %1691 = vmatprep.subr.bf16.mxu0 %v1851_v3  ;;  %1696 = vmatpush3.bf16.msra.mxu1 %v1937_v11  ;;  %s1403_s28 = sld [smem:[#allocation2 + $0x82]]  ;;  %s1854_s9 = smov 16   ;;  %vm704_vm6 = vcmask 517504   ;;  %vm868_vm7 = vcmask 648704   ;;  %vm1032_vm8 = vcmask 779904   ;;  %vm1196_vm9 = vcmask 911104  }
  0x14   :  { %1697 = vmatprep.subr.bf16.mxu1 %v1851_v3  ;;  %s1407_s10 = sld [smem:[#allocation2 + $0x3]]  ;;  %s1855_s18 = smov 32   ;;  %vm1360_vm10 = vcmask 1042304  }
  0x15   :  { %s1408_s11 = sld [smem:[#allocation2 + $0x83]]  ;;  %s1417_s0 = sld [smem:[#allocation2 + $0x5]] }
  0x16   :  { %1693 = vmatpush3.bf16.msra.mxu0 %v1916_v7  ;;  %s44_s16 = scalar_lea.vmem %s2121_s1, %s43_s12  ;;  %s1418_s27 = sld [smem:[#allocation2 + $0x85]] }
  0x17   :  { %1700 = vmatprep.subr.bf16.mxu0 %v1851_v3  ;;  %1699 = vmatpush3.bf16.msra.mxu1 %v1943_v13  ;;  %s47_s3 = scalar_lea.vmem %s2121_s1, %s1393_s13  ;;  %v45_v14 = vld [vmem:[%s44_s16] sm:$0x1]  ;;  %s215_s23 = scalar_lea.vmem %s2121_s1, %s1397_s19 }
  0x18   :  { %1706 = vmatprep.subr.bf16.mxu1 %v1851_v3  ;;  %v1394_v15 = vld [vmem:[%s47_s3] ss:$0 sm:$0xff]  ;;  %s218_s26 = scalar_lea.vmem %s2121_s1, %s1398_s20  ;;  %s379_s30 = scalar_lea.vmem %s2121_s1, %s1402_s4 }
  0x19   :  { %1521 = vmatmul.mubr.f32.vlgmr.msra.gmra.mrb[0].mxu0 %v1853_v6  ;;  %v56_v16 = vsel %vm55_vm1, %v45_v14, %v1394_v15  ;;  %v216_v21 = vld [vmem:[%s215_s23] sm:$0x1]  ;;  %s382_s8 = scalar_lea.vmem %s2121_s1, %s1403_s28  ;;  %s1412_s3 = sld [smem:[#allocation2 + $0x4]] }
  0x1a   :  { %1702 = vmatpush3.bf16.msra.mxu0 %v1905_v4  ;;  %1542 = vmatprep.mubr.msk.f32.mxu0 %vm1852_vm0, %v1853_v6  ;;  %v1399_v22 = vld [vmem:[%s218_s26] ss:$0 sm:$0xff]  ;;  %s543_s14 = scalar_lea.vmem %s2121_s1, %s1407_s10  ;;  %s1413_s19 = sld [smem:[#allocation2 + $0x84]] }
  0x1b   :  { %1703 = vmatprep.subr.bf16.mxu0 %v1851_v3  ;;  %v226_v24 = vsel %vm55_vm1, %v216_v21, %v1399_v22  ;;  %v380_v32 = vld [vmem:[%s379_s30] sm:$0x1]  ;;  %s546_s17 = scalar_lea.vmem %s2121_s1, %s1408_s11  ;;  %s1856_s26 = smov 48  }
  0x1c   :  { %v1404_v33 = vld [vmem:[%s382_s8] ss:$0 sm:$0xff]  ;;  %s871_s29 = scalar_lea.vmem %s2121_s1, %s1417_s0  ;;  %s874_s6 = scalar_lea.vmem %s2121_s1, %s1418_s27 }
  0x1d   :  { %v390_v34 = vsel %vm55_vm1, %v380_v32, %v1404_v33  ;;  %v544_v43 = vld [vmem:[%s543_s14] sm:$0x1]  ;;  %s1857_s7 = smov 64   ;;  %s1422_s8 = sld [smem:[#allocation2 + $0x6]] }
  0x1e   :  { %1705 = vmatpush3.bf16.msra.mxu0 %v1916_v7  ;;  %v1409_v44 = vld [vmem:[%s546_s17] ss:$0 sm:$0xff]  ;;  %s1858_s16 = smov 80   ;;  %s1427_s17 = sld [smem:[#allocation2 + $0x7]] }
  0x1f   :  { %1712 = vmatprep.subr.bf16.mxu0 %v1851_v3  ;;  %v554_v45 = vsel %vm55_vm1, %v544_v43, %v1409_v44  ;;  %s707_s22 = scalar_lea.vmem %s2121_s1, %s1412_s3  ;;  %v872_v1 = vld [vmem:[%s871_s29] sm:$0x1]  ;;  %s1859_s24 = smov 96  }
  0x20   :  { %s710_s25 = scalar_lea.vmem %s2121_s1, %s1413_s19  ;;  %v708_v54 = vld [vmem:[%s707_s22] sm:$0x1] }
  0x21   :  { %v1414_v55 = vld [vmem:[%s710_s25] ss:$0 sm:$0xff]  ;;  %s1861_s25 = smov [#allocation5]  }
  0x22   :  { %v718_v56 = vsel %vm55_vm1, %v708_v54, %v1414_v55  ;;  %v1419_v2 = vld [vmem:[%s874_s6] ss:$0 sm:$0xff] }
  0x23   :  { %v882_v5 = vsel %vm55_vm1, %v872_v1, %v1419_v2  ;;  %s1035_s12 = scalar_lea.vmem %s2121_s1, %s1422_s8 }
  0x24   :  { %s1199_s20 = scalar_lea.vmem %s2121_s1, %s1427_s17 }
  0xec   :  { %v127_v17 = vpop.f32.mrb[0].mxu0 }
  0xed   :  { %v131_v18 = vadd.f32 %v127_v17, %v56_v16  ;;  %v1522_v19 = vpop.f32.mrb[1].mxu0 }
  0xef   :  { %1796 = vtanh.f32 %v131_v18 }
  0xf9   :  { %v1797_v20 = vpop.eup %1796 }
  0xfa   :  { %1532 = vmatmul.mubr.msk.f32.vlgmr.msra.gmra.mrb[0].mxu1 %vm57_vm2, %v1797_v20  ;;  %1543 = vmatmul.mubr.msk.f32.vlgmr.msra.gmra.mrb[2].mxu0 %vm57_vm2, %v1797_v20 }
  0xfb   :  { %1708 = vmatpush3.bf16.msra.mxu1 %v1937_v11  ;;  %1714 = vmatpush3.bf16.msra.mxu0 %v1905_v4 }
  0xfc   :  { %1709 = vmatprep.subr.bf16.mxu1 %v1851_v3  ;;  %1715 = vmatprep.subr.bf16.mxu0 %v1851_v3 }
  0xfd   :  { %1553 = vmatprep.mubr.msk.f32.mxu1 %vm1852_vm0, %v1853_v6  ;;  %1564 = vmatprep.mubr.msk.f32.mxu0 %vm1852_vm0, %v1853_v6 }
  0xff   :  { %1711 = vmatpush3.bf16.msra.mxu1 %v1943_v13  ;;  %1717 = vmatpush3.bf16.msra.mxu0 %v1916_v7 }
 0x100   :  { %1718 = vmatprep.subr.bf16.mxu1 %v1851_v3  ;;  %1724 = vmatprep.subr.bf16.mxu0 %v1851_v3 }
 0x1cd   :  { %v208_v25 = vpop.f32.mrb[0].mxu1  ;;  %v293_v26 = vpop.f32.mrb[2].mxu0 }
 0x1ce   :  { %v209_v27 = vadd.f32 %v1978_v23, %v208_v25  ;;  %v297_v28 = vadd.f32 %v293_v26, %v226_v24  ;;  %v1533_v29 = vpop.f32.mrb[1].mxu1  ;;  %v1544_v30 = vpop.f32.mrb[3].mxu0 }
 0x1d0   :  { %213 = vst.msk [vmem:[#allocation5] sm:$0x3] %vm212_vm3, %v209_v27  ;;  %1798 = vtanh.f32 %v297_v28 }
 0x1da   :  { %v1799_v31 = vpop.eup %1798 }
 0x1db   :  { %1554 = vmatmul.mubr.msk.f32.vlgmr.msra.gmra.mrb[2].mxu1 %vm57_vm2, %v1799_v31  ;;  %1565 = vmatmul.mubr.msk.f32.vlgmr.msra.gmra.mrb[4].mxu0 %vm57_vm2, %v1799_v31 }
 0x1dc   :  { %1720 = vmatpush3.bf16.msra.mxu1 %v1937_v11  ;;  %1726 = vmatpush3.bf16.msra.mxu0 %v1905_v4 }
 0x1dd   :  { %1721 = vmatprep.subr.bf16.mxu1 %v1851_v3  ;;  %1727 = vmatprep.subr.bf16.mxu0 %v1851_v3 }
 0x1de   :  { %1575 = vmatprep.mubr.msk.f32.mxu1 %vm1852_vm0, %v1853_v6  ;;  %1586 = vmatprep.mubr.msk.f32.mxu0 %vm1852_vm0, %v1853_v6 }
 0x1e0   :  { %1723 = vmatpush3.bf16.msra.mxu1 %v1943_v13  ;;  %1729 = vmatpush3.bf16.msra.mxu0 %v1916_v7 }
 0x1e1   :  { %1730 = vmatprep.subr.bf16.mxu1 %v1851_v3  ;;  %1736 = vmatprep.subr.bf16.mxu0 %v1851_v3 }
 0x2ae   :  { %v368_v35 = vpop.f32.mrb[2].mxu1  ;;  %v457_v36 = vpop.f32.mrb[4].mxu0 }
 0x2af   :  { %v369_v37 = vadd.f32 %v1978_v23, %v368_v35  ;;  %v461_v38 = vadd.f32 %v457_v36, %v390_v34  ;;  %v1555_v39 = vpop.f32.mrb[3].mxu1  ;;  %v1566_v40 = vpop.f32.mrb[5].mxu0 }
 0x2b1   :  { %1800 = vtanh.f32 %v461_v38  ;;  %373 = vrot.lane.b32.xlu0 %v369_v37, %s1854_s9  ;;  %s1423_s9 = sld [smem:[#allocation2 + $0x86]] }
 0x2b7   :  { %s1038_s15 = scalar_lea.vmem %s2121_s1, %s1423_s9 }
 0x2b8   :  { %v1424_v18 = vld [vmem:[%s1038_s15] ss:$0 sm:$0xff] }
 0x2bb   :  { %v1801_v41 = vpop.eup %1800 }
 0x2bc   :  { %1576 = vmatmul.mubr.msk.f32.vlgmr.msra.gmra.mrb[4].mxu1 %vm57_vm2, %v1801_v41  ;;  %1587 = vmatmul.mubr.msk.f32.vlgmr.msra.gmra.mrb[6].mxu0 %vm57_vm2, %v1801_v41 }
 0x2bd   :  { %1732 = vmatpush3.bf16.msra.mxu1 %v1937_v11  ;;  %1738 = vmatpush3.bf16.msra.mxu0 %v1905_v4 }
 0x2be   :  { %1733 = vmatprep.subr.bf16.mxu1 %v1851_v3  ;;  %1739 = vmatprep.subr.bf16.mxu0 %v1851_v3 }
 0x2bf   :  { %1597 = vmatprep.mubr.msk.f32.mxu1 %vm1852_vm0, %v1853_v6  ;;  %1608 = vmatprep.mubr.msk.f32.mxu0 %vm1852_vm0, %v1853_v6 }
 0x2c1   :  { %1735 = vmatpush3.bf16.msra.mxu1 %v1943_v13  ;;  %1741 = vmatpush3.bf16.msra.mxu0 %v1916_v7 }
 0x2c2   :  { %1742 = vmatprep.subr.bf16.mxu1 %v1851_v3  ;;  %1748 = vmatprep.subr.bf16.mxu0 %v1851_v3 }
 0x323   :  { %v374_v42 = vpop.permute.xlu0 %373 }
 0x324   :  { %377 = vst.msk [vmem:[#allocation5] sm:$0x3] %vm376_vm4, %v374_v42 }
 0x38f   :  { %v532_v46 = vpop.f32.mrb[4].mxu1  ;;  %v621_v47 = vpop.f32.mrb[6].mxu0 }
 0x390   :  { %v533_v48 = vadd.f32 %v1978_v23, %v532_v46  ;;  %v625_v49 = vadd.f32 %v621_v47, %v554_v45  ;;  %v1577_v50 = vpop.f32.mrb[5].mxu1  ;;  %v1588_v51 = vpop.f32.mrb[7].mxu0 }
 0x392   :  { %1802 = vtanh.f32 %v625_v49  ;;  %537 = vrot.lane.b32.xlu0 %v533_v48, %s1855_s18  ;;  %s1428_s18 = sld [smem:[#allocation2 + $0x87]] }
 0x398   :  { %s1202_s23 = scalar_lea.vmem %s2121_s1, %s1428_s18  ;;  %s1860_s1 = smov 112  }
 0x399   :  { %v1429_v28 = vld [vmem:[%s1202_s23] ss:$0 sm:$0xff] }
 0x39c   :  { %v1803_v52 = vpop.eup %1802 }
 0x39d   :  { %1598 = vmatmul.mubr.msk.f32.vlgmr.msra.gmra.mrb[6].mxu1 %vm57_vm2, %v1803_v52  ;;  %1609 = vmatmul.mubr.msk.f32.vlgmr.msra.gmra.mrb[8].mxu0 %vm57_vm2, %v1803_v52 }
 0x39e   :  { %1744 = vmatpush3.bf16.msra.mxu1 %v1937_v11  ;;  %1750 = vmatpush3.bf16.msra.mxu0 %v1905_v4 }
 0x39f   :  { %1745 = vmatprep.subr.bf16.mxu1 %v1851_v3  ;;  %1751 = vmatprep.subr.bf16.mxu0 %v1851_v3 }
 0x3a0   :  { %1619 = vmatprep.mubr.msk.f32.mxu1 %vm1852_vm0, %v1853_v6  ;;  %1630 = vmatprep.mubr.msk.f32.mxu0 %vm1852_vm0, %v1853_v6 }
 0x3a2   :  { %1747 = vmatpush3.bf16.msra.mxu1 %v1943_v13  ;;  %1753 = vmatpush3.bf16.msra.mxu0 %v1916_v7 }
 0x3a3   :  { %1754 = vmatprep.subr.bf16.mxu1 %v1851_v3  ;;  %1760 = vmatprep.subr.bf16.mxu0 %v1851_v3 }
 0x404   :  { %v538_v53 = vpop.permute.xlu0 %537 }
 0x405   :  { %541 = vst.msk [vmem:[#allocation5] sm:$0x3] %vm540_vm5, %v538_v53 }
 0x470   :  { %v696_v57 = vpop.f32.mrb[6].mxu1  ;;  %v785_v58 = vpop.f32.mrb[8].mxu0 }
 0x471   :  { %v697_v59 = vadd.f32 %v1978_v23, %v696_v57  ;;  %v789_v60 = vadd.f32 %v785_v58, %v718_v56  ;;  %v1599_v61 = vpop.f32.mrb[7].mxu1  ;;  %v1610_v62 = vpop.f32.mrb[9].mxu0 }
 0x473   :  { %1804 = vtanh.f32 %v789_v60  ;;  %701 = vrot.lane.b32.xlu1 %v697_v59, %s1856_s26  ;;  %s1368_s26 = sshll.u32 %s1861_s25, 4  ;;  %s1369_s26 = int_to_ptr.vmem [resolvable:$true] %s1368_s26 }
 0x474   :  { %s1824_s0 = scalar_lea.vmem %s1369_s26, 32  ;;  %p1829_p6 = scmp.lt.s32.totalorder %s1369_s26, %s1369_s26 }
 0x475   :  { %p1825_p5 = scmp.ne.s32.totalorder %s1369_s26, %s1824_s0  ;;  %p1830_p7 = scmp.lt.s32.totalorder %s1824_s0, %s1824_s0 }
 0x477   :  { %p1831_p8 = por %p1830_p7, %p1829_p6 }
 0x479   :  { %p1832_p9 = pnand %p1831_p8, %p1825_p5 }
 0x47d   :  { %v1805_v63 = vpop.eup %1804 }
 0x47e   :  { %1620 = vmatmul.mubr.msk.f32.vlgmr.msra.gmra.mrb[8].mxu1 %vm57_vm2, %v1805_v63  ;;  %1631 = vmatmul.mubr.msk.f32.vlgmr.msra.gmra.mrb[10].mxu0 %vm57_vm2, %v1805_v63 }
 0x47f   :  { %1756 = vmatpush3.bf16.msra.mxu1 %v1937_v11  ;;  %1762 = vmatpush3.bf16.msra.mxu0 %v1905_v4 }
 0x480   :  { %1757 = vmatprep.subr.bf16.mxu1 %v1851_v3  ;;  %1763 = vmatprep.subr.bf16.mxu0 %v1851_v3 }
 0x481   :  { %1641 = vmatprep.mubr.msk.f32.mxu1 %vm1852_vm0, %v1853_v6  ;;  %1652 = vmatprep.mubr.msk.f32.mxu0 %vm1852_vm0, %v1853_v6 }
 0x483   :  { %1759 = vmatpush3.bf16.msra.mxu1 %v1943_v13  ;;  %1765 = vmatpush3.bf16.msra.mxu0 %v1916_v7 }
 0x484   :  { %1766 = vmatprep.subr.bf16.mxu1 %v1851_v3  ;;  %1772 = vmatprep.subr.bf16.mxu0 %v1851_v3 }
 0x4e5   :  { %v702_v0 = vpop.permute.xlu1 %701 }
 0x4e6   :  { %705 = vst.msk [vmem:[#allocation5] sm:$0x3] %vm704_vm6, %v702_v0 }
 0x551   :  { %v860_v8 = vpop.f32.mrb[8].mxu1  ;;  %v949_v9 = vpop.f32.mrb[10].mxu0 }
 0x552   :  { %v861_v10 = vadd.f32 %v1978_v23, %v860_v8  ;;  %v953_v12 = vadd.f32 %v949_v9, %v882_v5  ;;  %v1621_v14 = vpop.f32.mrb[9].mxu1  ;;  %v1632_v15 = vpop.f32.mrb[11].mxu0 }
 0x554   :  { %1806 = vtanh.f32 %v953_v12  ;;  %865 = vrot.lane.b32.xlu1 %v861_v10, %s1857_s7 }
 0x55e   :  { %v1807_v16 = vpop.eup %1806 }
 0x55f   :  { %1642 = vmatmul.mubr.msk.f32.vlgmr.msra.gmra.mrb[10].mxu1 %vm57_vm2, %v1807_v16  ;;  %1653 = vmatmul.mubr.msk.f32.vlgmr.msra.gmra.mrb[12].mxu0 %vm57_vm2, %v1807_v16 }
 0x560   :  { %1768 = vmatpush3.bf16.msra.mxu1 %v1937_v11  ;;  %1774 = vmatpush3.bf16.msra.mxu0 %v1905_v4  ;;  %v1036_v4 = vld [vmem:[%s1035_s12] sm:$0x1] }
 0x561   :  { %1769 = vmatprep.subr.bf16.mxu1 %v1851_v3  ;;  %1775 = vmatprep.subr.bf16.mxu0 %v1851_v3  ;;  %v1046_v19 = vsel %vm55_vm1, %v1036_v4, %v1424_v18 }
 0x562   :  { %1663 = vmatprep.mubr.msk.f32.mxu1 %vm1852_vm0, %v1853_v6  ;;  %1674 = vmatprep.mubr.msk.f32.mxu0 %vm1852_vm0, %v1853_v6 }
 0x564   :  { %1771 = vmatpush3.bf16.msra.mxu1 %v1943_v13  ;;  %1777 = vmatpush3.bf16.msra.mxu0 %v1916_v7 }
 0x565   :  { %1778 = vmatprep.subr.bf16.mxu1 %v1851_v3 }
 0x5c6   :  { %v866_v17 = vpop.permute.xlu1 %865 }
 0x5c7   :  { %869 = vst.msk [vmem:[#allocation5] sm:$0x3] %vm868_vm7, %v866_v17 }
 0x632   :  { %v1024_v7 = vpop.f32.mrb[10].mxu1  ;;  %v1113_v20 = vpop.f32.mrb[12].mxu0 }
 0x633   :  { %v1025_v21 = vadd.f32 %v1978_v23, %v1024_v7  ;;  %v1117_v22 = vadd.f32 %v1113_v20, %v1046_v19  ;;  %v1643_v24 = vpop.f32.mrb[11].mxu1  ;;  %v1654_v25 = vpop.f32.mrb[13].mxu0 }
 0x635   :  { %1808 = vtanh.f32 %v1117_v22  ;;  %1029 = vrot.lane.b32.xlu0 %v1025_v21, %s1858_s16 }
 0x63f   :  { %v1809_v26 = vpop.eup %1808 }
 0x640   :  { %1664 = vmatmul.mubr.msk.f32.vlgmr.msra.gmra.mrb[12].mxu1 %vm57_vm2, %v1809_v26  ;;  %1675 = vmatmul.mubr.msk.f32.vlgmr.msra.gmra.mrb[14].mxu0 %vm57_vm2, %v1809_v26 }
 0x641   :  { %1780 = vmatpush3.bf16.msra.mxu1 %v1937_v11  ;;  %1685 = vmatprep.mubr.msk.f32.mxu1 %vm1852_vm0, %v1853_v6  ;;  %v1200_v11 = vld [vmem:[%s1199_s20] sm:$0x1] }
 0x642   :  { %1781 = vmatprep.subr.bf16.mxu1 %v1851_v3  ;;  %v1210_v6 = vsel %vm55_vm1, %v1200_v11, %v1429_v28 }
 0x645   :  { %1783 = vmatpush3.bf16.msra.mxu1 %v1943_v13 }
 0x6a7   :  { %v1030_v27 = vpop.permute.xlu0 %1029 }
 0x6a8   :  { %1033 = vst.msk [vmem:[#allocation5] sm:$0x3] %vm1032_vm8, %v1030_v27 }
 0x713   :  { %v1188_v3 = vpop.f32.mrb[12].mxu1  ;;  %v1277_v29 = vpop.f32.mrb[14].mxu0 }
 0x714   :  { %v1189_v13 = vadd.f32 %v1978_v23, %v1188_v3  ;;  %v1281_v30 = vadd.f32 %v1277_v29, %v1210_v6  ;;  %v1665_v31 = vpop.f32.mrb[13].mxu1  ;;  %v1676_v32 = vpop.f32.mrb[15].mxu0 }
 0x716   :  { %1810 = vtanh.f32 %v1281_v30  ;;  %1193 = vrot.lane.b32.xlu1 %v1189_v13, %s1859_s24 }
 0x720   :  { %v1811_v33 = vpop.eup %1810 }
 0x721   :  { %1686 = vmatmul.mubr.msk.f32.vlgmr.msra.gmra.mrb[14].mxu1 %vm57_vm2, %v1811_v33 }
 0x788   :  { %v1194_v34 = vpop.permute.xlu1 %1193 }
 0x789   :  { %1197 = vst.msk [vmem:[#allocation5] sm:$0x3] %vm1196_vm9, %v1194_v34 }
 0x7f4   :  { %v1352_v35 = vpop.f32.mrb[14].mxu1 }
 0x7f5   :  { %v1353_v36 = vadd.f32 %v1978_v23, %v1352_v35  ;;  %v1687_v37 = vpop.f32.mrb[15].mxu1 }
 0x7f7   :  { %1357 = vrot.lane.b32.xlu0 %v1353_v36, %s1860_s1 }
 0x869   :  { %v1358_v38 = vpop.permute.xlu0 %1357 }
 0x86a   :  { %1361 = vst.msk [vmem:[#allocation5] sm:$0x3] %vm1360_vm10, %v1358_v38 }
 0x86b   :  { %1835 = shalt.err (!%p1832_p9)
}
 0x86c   :  { %s1836_s28 = scalar_lea.hbm %s2125_s5, 32 }
 0x86d   :  { %p1837_p10 = scmp.ne.s32.totalorder %s2125_s5, %s1836_s28  ;;  %p1840_p11 = scmp.lt.u32.totalorder %s1836_s28, %s2125_s5 }
 0x86f   :  { %p1842_p12 = pnand %p1840_p11, %p1837_p10 }
 0x871   :  { %1845 = shalt.err (!%p1842_p12)
}
 0x872   :  { %1371 = dma.vmem_to_hbm [thread:$0]  %s1369_s26, 32, %s2125_s5, [#allocation3]  }
 0x873   :  { %1848 = dma.done.wait [#allocation3], 32  }
 0x874   :  { %1849 = vsyncadd [#allocation3], 4294967264 }
 0x875   :  { %1375 = vsyncpa [#allocation3], 1 }
 0x876   :  { %1376 = vsyncpa [#allocation4], 1 }

</bundles_post_ra>
